<compile_context>
chip_gen: v7x
topology: tpu7x:2x2x1
jax: 0.10.0
libtpu: 0.0.40
codegen_flags: <defaults>
</compile_context>

<pallas_src>
import jax
import jax.numpy as jnp
from jax.experimental import pallas as pl
from jax.experimental.pallas import tpu as pltpu


# ---------------------------------------------------------------------------
# Kernel
# ---------------------------------------------------------------------------

def _pl_sigmoid_kernel(beta_ref, slope_ref, x_ref, o_ref):
    # beta/slope blocks are either (tm, 1) (broadcast along lanes) or (1, tl)
    # (broadcast along sublanes) depending on the layout chosen by the wrapper.
    x = x_ref[...].astype(jnp.float32)
    beta = beta_ref[...].astype(jnp.float32)
    slope = slope_ref[...].astype(jnp.float32)
    z = slope * x
    # sigmoid(z) == 0.5 * tanh(0.5 * z) + 0.5 : single EUP transcendental,
    # numerically tight, and saturates (no inf/NaN) on padded garbage.
    y = beta * (0.5 * jnp.tanh(0.5 * z) + 0.5)
    o_ref[...] = y.astype(o_ref.dtype)


# ---------------------------------------------------------------------------
# Tiling helpers
# ---------------------------------------------------------------------------

_SMALL_L_THRESHOLD = 512


def _round_up(a, m):
    return (a + m - 1) // m * m


def _sublane_multiple(dtype):
    bits = jnp.dtype(dtype).itemsize * 8
    if bits >= 32:
        return 8
    if bits == 16:
        return 16
    return 32


def _vmem_budget():
    """(vmem_limit_bytes for the call, per-step VMEM target for tiling)."""
    try:
        info = pltpu.get_tpu_info()
        vmem = getattr(info, "vmem_capacity_bytes", 64 * 1024 * 1024)
    except Exception:  # pragma: no cover - conservative fallback
        vmem = 64 * 1024 * 1024
    if vmem >= 96 * 1024 * 1024:
        # v5e / v6e: 128 MiB per TensorCore -> bigger tiles amortize the
        # ~0.35 us per-step overhead.
        return 64 * 1024 * 1024, 40 * 1024 * 1024
    # v7x: 64 MiB per TensorCore -> stay well under half.
    return 32 * 1024 * 1024, 24 * 1024 * 1024


def _largest_divisor_units(total_units, max_units):
    """Largest d dividing total_units with 1 <= d <= max_units."""
    max_units = max(1, min(max_units, total_units))
    best = 1
    for d in range(1, total_units + 1):
        if d > max_units:
            break
        if total_units % d == 0:
            best = d
    return best


def _pick_tiles_lane_dense(rows, cols, itemsize, sub, vmem_target):
    """Tiles for the (B, C*L) layout with (1, cols) params."""
    cols_p = _round_up(cols, 128)
    min_rows = min(rows, sub)
    # Per-lane cost with min_rows rows: double-buffered x + out plus two
    # (1, tl) param blocks sublane-padded to (8, tl) f32.
    denom = 2 * (2 * min_rows * itemsize + 2 * 8 * 4)
    tl_cap = max(128, vmem_target // denom)
    tl = 128 * _largest_divisor_units(cols_p // 128, tl_cap // 128)
    param_step = 2 * (2 * 8 * tl * 4)
    tm_cap = max(1, (vmem_target - param_step) // (2 * 2 * tl * itemsize))
    if tm_cap >= rows:
        tm = rows
    else:
        tm = max(sub, (tm_cap // sub) * sub)
    return tm, tl


def _pick_tiles_row_major(rows, cols, itemsize, sub, vmem_target):
    """Tiles for the (B*C, L) layout with (rows, 1) params."""
    cols_p = _round_up(cols, 128)
    min_rows = min(rows, sub)
    # Two (tm, 1) param blocks lane-pad to (tm, 128) f32 in VMEM.
    param_min = 2 * (2 * min_rows * 128 * 4)
    denom = 2 * (2 * min_rows * itemsize)
    tl_cap = max(128, (vmem_target - param_min) // denom)
    tl = 128 * _largest_divisor_units(cols_p // 128, tl_cap // 128)
    per_row = 2 * (2 * tl * itemsize + 2 * 128 * 4)
    tm_cap = max(1, vmem_target // per_row)
    if tm_cap >= rows:
        tm = rows
    else:
        tm = max(sub, (tm_cap // sub) * sub)
    return tm, tl


def _ensure_two_grid_steps(tm, tl, rows, cols, itemsize, sub):
    """Make sure non-trivial inputs have >= 2 grid steps (v7x megacore)."""
    if rows * cols * itemsize < (1 << 20):
        return tm, tl
    if pl.cdiv(rows, tm) * pl.cdiv(cols, tl) >= 2:
        return tm, tl
    # Prefer splitting rows (keeps stores lane-dense), else split lanes.
    if tm >= 2 * sub:
        half = max(sub, _round_up((tm + 1) // 2, sub))
        if half < tm:
            return half, tl
    if tl >= 256:
        return tm, _round_up(tl // 2, 128)
    return tm, tl


# ---------------------------------------------------------------------------
# Wrapper
# ---------------------------------------------------------------------------

def pl_sigmoid(x, beta, slope):
    """x: (B, C, L); beta, slope: (C, 1) or (C,). Returns beta*sigmoid(slope*x)."""
    B, C, L = x.shape
    itemsize = jnp.dtype(x.dtype).itemsize
    sub = _sublane_multiple(x.dtype)
    vmem_limit, vmem_target = _vmem_budget()

    beta_col = jnp.reshape(beta, (C, 1)).astype(jnp.float32)
    slope_col = jnp.reshape(slope, (C, 1)).astype(jnp.float32)

    if L < _SMALL_L_THRESHOLD:
        # ---- lane-dense layout: (B, C*L) with (1, C*L) param lane vectors ----
        rows, cols = B, C * L
        x2 = x.reshape(rows, cols)
        beta2 = jnp.broadcast_to(beta_col, (C, L)).reshape(1, cols)
        slope2 = jnp.broadcast_to(slope_col, (C, L)).reshape(1, cols)

        tm, tl = _pick_tiles_lane_dense(rows, cols, itemsize, sub, vmem_target)
        tm, tl = _ensure_two_grid_steps(tm, tl, rows, cols, itemsize, sub)

        in_specs = [
            pl.BlockSpec((1, tl), lambda i, j: (0, j)),    # beta  (lane vector)
            pl.BlockSpec((1, tl), lambda i, j: (0, j)),    # slope (lane vector)
            pl.BlockSpec((tm, tl), lambda i, j: (i, j)),   # x tile
        ]
        param_bytes = 2 * cols * 4
    else:
        # ---- row-major layout: (B*C, L) with (B*C, 1) params ----
        rows, cols = B * C, L
        x2 = x.reshape(rows, cols)
        beta2 = jnp.tile(beta_col, (B, 1))     # row r = b*C + c -> beta[c]
        slope2 = jnp.tile(slope_col, (B, 1))

        tm, tl = _pick_tiles_row_major(rows, cols, itemsize, sub, vmem_target)
        tm, tl = _ensure_two_grid_steps(tm, tl, rows, cols, itemsize, sub)

        in_specs = [
            pl.BlockSpec((tm, 1), lambda i, j: (i, 0)),    # beta rows
            pl.BlockSpec((tm, 1), lambda i, j: (i, 0)),    # slope rows
            pl.BlockSpec((tm, tl), lambda i, j: (i, j)),   # x tile
        ]
        param_bytes = 2 * rows * 4

    grid = (pl.cdiv(rows, tm), pl.cdiv(cols, tl))
    total = B * C * L

    out2 = pl.pallas_call(
        _pl_sigmoid_kernel,
        out_shape=jax.ShapeDtypeStruct((rows, cols), x.dtype),
        grid_spec=pl.GridSpec(
            grid=grid,
            in_specs=in_specs,
            out_specs=pl.BlockSpec((tm, tl), lambda i, j: (i, j)),
        ),
        compiler_params=pltpu.CompilerParams(
            dimension_semantics=("parallel", "parallel"),
            vmem_limit_bytes=vmem_limit,
        ),
        cost_estimate=pl.CostEstimate(
            flops=4 * total,
            transcendentals=total,
            bytes_accessed=2 * total * itemsize + param_bytes,
        ),
    )(beta2, slope2, x2)

    return out2.reshape(B, C, L)


def pl_sigmoid_ref(x, beta, slope):
    b = jnp.reshape(beta, (beta.shape[0], 1))
    s = jnp.reshape(slope, (slope.shape[0], 1))
    return b * jax.nn.sigmoid(s * x)


# ---------------------------------------------------------------------------
# Self-test
# ---------------------------------------------------------------------------

if __name__ == "__main__":
    key = jax.random.PRNGKey(0)

    # Small-L (lane-dense) path: batch=2, in_features=8, seq=128.
    B, C, L = 2, 8, 128
    x = jax.random.normal(key, (B, C, L), dtype=jnp.float32)
    # Deterministic per-channel params (module init is ones*2 / ones; vary
    # them slightly so the per-channel broadcast mapping is actually checked).
    beta = 2.0 + 0.1 * jnp.arange(C, dtype=jnp.float32).reshape(C, 1)
    slope = 1.0 + 0.05 * jnp.arange(C, dtype=jnp.float32).reshape(C, 1)

    out = jax.block_until_ready(pl_sigmoid(x, beta, slope))
    ref = pl_sigmoid_ref(x, beta, slope)
    assert out.shape == (B, C, L)
    assert jnp.allclose(out, ref, atol=1e-5, rtol=1e-5), "mismatch (small-L path)"

    # Large-L (row-major) path: exercises the other tiling branch.
    B2, C2, L2 = 2, 4, 640
    x2 = jax.random.normal(jax.random.PRNGKey(1), (B2, C2, L2), dtype=jnp.float32)
    beta2 = 2.0 + 0.1 * jnp.arange(C2, dtype=jnp.float32).reshape(C2, 1)
    slope2 = 1.0 + 0.05 * jnp.arange(C2, dtype=jnp.float32).reshape(C2, 1)

    out2 = jax.block_until_ready(pl_sigmoid(x2, beta2, slope2))
    ref2 = pl_sigmoid_ref(x2, beta2, slope2)
    assert out2.shape == (B2, C2, L2)
    assert jnp.allclose(out2, ref2, atol=1e-5, rtol=1e-5), "mismatch (large-L path)"

    print("KERNEL_OK")
</pallas_src>

<mosaic_0001>
module attributes {stable_mosaic.version = 11 : i64} {
  func.func @_pl_sigmoid_kernel(%arg0: i32, %arg1: i32, %arg2: memref<1x1024xf32, #tpu.memory_space<vmem>>, %arg3: memref<1x1024xf32, #tpu.memory_space<vmem>>, %arg4: memref<2x1024xf32, #tpu.memory_space<vmem>>, %arg5: memref<2x1024xf32, #tpu.memory_space<vmem>>) attributes {dimension_semantics = [#tpu.dimension_semantics<parallel>, #tpu.dimension_semantics<parallel>], iteration_bounds = array<i64: 1, 1>, scalar_prefetch = 0 : i64, scratch_operands = 0 : i64, tpu.core_type = #tpu.core_type<tc>, window_params = [{transform_indices = @transform_0, window_bounds = array<i64: 1, 1024>}, {transform_indices = @transform_1, window_bounds = array<i64: 1, 1024>}, {transform_indices = @transform_2, window_bounds = array<i64: 2, 1024>}, {transform_indices = @transform_3, window_bounds = array<i64: 2, 1024>}]} {
    %c0 = arith.constant 0 : index
    %c0_0 = arith.constant 0 : index
    %0 = vector.load %arg4[%c0, %c0_0] : memref<2x1024xf32, #tpu.memory_space<vmem>>, vector<2x1024xf32>
    %c0_1 = arith.constant 0 : index
    %c0_2 = arith.constant 0 : index
    %1 = vector.load %arg2[%c0_1, %c0_2] : memref<1x1024xf32, #tpu.memory_space<vmem>>, vector<1x1024xf32>
    %c0_3 = arith.constant 0 : index
    %c0_4 = arith.constant 0 : index
    %2 = vector.load %arg3[%c0_3, %c0_4] : memref<1x1024xf32, #tpu.memory_space<vmem>>, vector<1x1024xf32>
    %3 = vector.broadcast %2 : vector<1x1024xf32> to vector<2x1024xf32>
    %4 = arith.mulf %3, %0 : vector<2x1024xf32>
    %cst = arith.constant 5.000000e-01 : f32
    %5 = vector.broadcast %cst : f32 to vector<2x1024xf32>
    %6 = arith.mulf %5, %4 : vector<2x1024xf32>
    %7 = math.tanh %6 : vector<2x1024xf32>
    %cst_5 = arith.constant 5.000000e-01 : f32
    %8 = vector.broadcast %cst_5 : f32 to vector<2x1024xf32>
    %9 = arith.mulf %8, %7 : vector<2x1024xf32>
    %cst_6 = arith.constant 5.000000e-01 : f32
    %10 = vector.broadcast %cst_6 : f32 to vector<2x1024xf32>
    %11 = arith.addf %9, %10 : vector<2x1024xf32>
    %12 = vector.broadcast %1 : vector<1x1024xf32> to vector<2x1024xf32>
    %13 = arith.mulf %12, %11 : vector<2x1024xf32>
    %c0_7 = arith.constant 0 : index
    %c0_8 = arith.constant 0 : index
    %14 = vector.load %arg5[%c0_7, %c0_8] : memref<2x1024xf32, #tpu.memory_space<vmem>>, vector<2x1024xf32>
    tpu.vector_store %arg5[%c0_7, %c0_8], %13 {strides = array<i32>} : memref<2x1024xf32, #tpu.memory_space<vmem>>, vector<2x1024xf32>,
    return
  }
  func.func @transform_0(%arg0: i32, %arg1: i32) -> (i32, i32) {
    %c0_i32 = arith.constant 0 : i32
    %c0_i32_0 = arith.constant 0 : i32
    return %c0_i32, %arg1 : i32, i32
  }
  func.func @transform_1(%arg0: i32, %arg1: i32) -> (i32, i32) {
    %c0_i32 = arith.constant 0 : i32
    %c0_i32_0 = arith.constant 0 : i32
    return %c0_i32, %arg1 : i32, i32
  }
  func.func @transform_2(%arg0: i32, %arg1: i32) -> (i32, i32) {
    %c0_i32 = arith.constant 0 : i32
    return %arg0, %arg1 : i32, i32
  }
  func.func @transform_3(%arg0: i32, %arg1: i32) -> (i32, i32) {
    %c0_i32 = arith.constant 0 : i32
    return %arg0, %arg1 : i32, i32
  }
}

</mosaic_0001>

<bundles_post_ra>
// kernel: tpu_custom_call.1
= control target key start
LH: loop header
LB: loop body
LE: loop exit
PB: predicated region body
PF: predicated region fallthrough
CT: control target
= control target key end

     0   :  { %8 = vsyncpa [#allocation3], 0  ;;  %s521_s0 = inlined_call_operand.hbm [shape: f32[1,1024], index: 0, kind: input, shape index: {}]   ;;  %s522_s1 = inlined_call_operand.hbm [shape: f32[1,1024], index: 1, kind: input, shape index: {}]   ;;  %s523_s2 = inlined_call_operand.hbm [shape: f32[2,1024], index: 2, kind: input, shape index: {}]   ;;  %s524_s3 = inlined_call_operand.hbm [shape: f32[2,1024], index: 3, kind: output, shape index: {}]  }
   0x1   :  { %9 = vsyncpa [#allocation6], 0 }
   0x2   :  { %10 = vsyncpa [#allocation4], 0  ;;  %s407_s12 = smov [#allocation5]   ;;  %s408_s14 = smov [#allocation2]  }
   0x3   :  { %s27_s13 = sshll.u32 %s407_s12, 4  ;;  %s17_s15 = sshll.u32 %s408_s14, 4  ;;  %s28_s13 = int_to_ptr.vmem [resolvable:$true] %s27_s13  ;;  %s18_s15 = int_to_ptr.vmem [resolvable:$true] %s17_s15 }
   0x4   :  { %s313_s18 = scalar_lea.hbm %s522_s1, 128 }
   0x5   :  { %p314_p0 = scmp.ne.s32.totalorder %s522_s1, %s313_s18  ;;  %p317_p1 = scmp.lt.u32.totalorder %s313_s18, %s522_s1 }
   0x7   :  { %p319_p2 = pnand %p317_p1, %p314_p0 }
   0x9   :  { %322 = shalt.err (!%p319_p2)
}
   0xa   :  { %s323_s23 = scalar_lea.vmem %s28_s13, 128  ;;  %p328_p4 = scmp.lt.s32.totalorder %s28_s13, %s28_s13 }
   0xb   :  { %p324_p3 = scmp.ne.s32.totalorder %s28_s13, %s323_s23  ;;  %p329_p5 = scmp.lt.s32.totalorder %s323_s23, %s323_s23 }
   0xd   :  { %p330_p6 = por %p329_p5, %p328_p4 }
   0xf   :  { %p331_p7 = pnand %p330_p6, %p324_p3 }
  0x11   :  { %334 = shalt.err (!%p331_p7)
}
  0x12   :  { %30 = dma.hbm_to_vmem [thread:$0]  %s522_s1, 128, %s28_s13, [#allocation6]  }
  0x13   :  { %s335_s28 = scalar_lea.hbm %s521_s0, 128 }
  0x14   :  { %p336_p8 = scmp.ne.s32.totalorder %s521_s0, %s335_s28  ;;  %p339_p9 = scmp.lt.u32.totalorder %s335_s28, %s521_s0 }
  0x16   :  { %p341_p10 = pnand %p339_p9, %p336_p8 }
  0x18   :  { %344 = shalt.err (!%p341_p10)
}
  0x19   :  { %s345_s6 = scalar_lea.vmem %s18_s15, 128  ;;  %p350_p12 = scmp.lt.s32.totalorder %s18_s15, %s18_s15 }
  0x1a   :  { %p346_p11 = scmp.ne.s32.totalorder %s18_s15, %s345_s6  ;;  %p351_p13 = scmp.lt.s32.totalorder %s345_s6, %s345_s6 }
  0x1c   :  { %p352_p0 = por %p351_p13, %p350_p12 }
  0x1e   :  { %p353_p1 = pnand %p352_p0, %p346_p11 }
  0x20   :  { %356 = shalt.err (!%p353_p1)
}
  0x21   :  { %20 = dma.hbm_to_vmem [thread:$0]  %s521_s0, 128, %s18_s15, [#allocation3]  }
  0x22   :  { %s409_s8 = smov [#allocation7]   ;;  %s357_s12 = scalar_lea.hbm %s523_s2, 256 }
  0x23   :  { %s37_s9 = sshll.u32 %s409_s8, 4  ;;  %p358_p2 = scmp.ne.s32.totalorder %s523_s2, %s357_s12  ;;  %s38_s9 = int_to_ptr.vmem [resolvable:$true] %s37_s9 }
  0x24   :  { %p361_p3 = scmp.lt.u32.totalorder %s357_s12, %s523_s2 }
  0x26   :  { %p363_p4 = pnand %p361_p3, %p358_p2 }
  0x28   :  { %366 = shalt.err (!%p363_p4)
}
  0x29   :  { %s367_s18 = scalar_lea.vmem %s38_s9, 256  ;;  %p372_p6 = scmp.lt.s32.totalorder %s38_s9, %s38_s9 }
  0x2a   :  { %p368_p5 = scmp.ne.s32.totalorder %s38_s9, %s367_s18  ;;  %p373_p7 = scmp.lt.s32.totalorder %s367_s18, %s367_s18 }
  0x2c   :  { %p374_p8 = por %p373_p7, %p372_p6 }
  0x2e   :  { %p375_p9 = pnand %p374_p8, %p368_p5 }
  0x30   :  { %378 = shalt.err (!%p375_p9)
}
  0x31   :  { %40 = dma.hbm_to_vmem [thread:$0]  %s523_s2, 256, %s38_s9, [#allocation6]  }
  0x32   :  { %401 = dma.done.wait [#allocation3], 128  }
  0x33   :  { %402 = vsyncadd [#allocation3], 4294967168 }
  0x34   :  { %403 = dma.done.wait [#allocation6], 384  }
  0x35   :  { %404 = vsyncadd [#allocation6], 4294966912  ;;  %v55_v0 = vlaneseq  ;;  %v410_v1 = vmov 1983009808   ;;  %v50_v10 = vld [vmem:[#allocation7] sm:$0xff]  ;;  %v53_v11 = vld [vmem:[#allocation5] sm:$0xff] }
  0x36   :  { %v99_v2 = vunpack.c.l.s4 %v410_v1  ;;  %v97_v18 = vcombine.high %v50_v10, %v50_v10  ;;  %v51_v20 = vld [vmem:[#allocation7 + $0x8] sm:$0xff]  ;;  %v52_v51 = vld [vmem:[#allocation2] sm:$0xff]  ;;  %s411_s2 = smov [#allocation8]  }
  0x37   :  { %v468_v3 = vshrl.u32 %v55_v0, 7  ;;  %v114_v29 = vcombine.high %v51_v20, %v51_v20  ;;  %s280_s19 = sshll.u32 %s411_s2, 4  ;;  %s281_s19 = int_to_ptr.vmem [resolvable:$true] %s280_s19 }
  0x38   :  { %v100_v4 = vunpack.c.0.s8 %v99_v2  ;;  %s379_s20 = scalar_lea.vmem %s281_s19, 256  ;;  %p384_p11 = scmp.lt.s32.totalorder %s281_s19, %s281_s19 }
  0x39   :  { %v57_v5 = vsub.s32 0, %v468_v3  ;;  %v61_v6 = vsub.s32 1, %v468_v3  ;;  %v65_v7 = vsub.s32 2, %v468_v3  ;;  %v73_v9 = vsub.s32 4, %v468_v3  ;;  %p380_p10 = scmp.ne.s32.totalorder %s281_s19, %s379_s20  ;;  %p385_p12 = scmp.lt.s32.totalorder %s379_s20, %s379_s20 }
  0x3a   :  { %v474_v8 = vsub.s32 %v100_v4, %v468_v3  ;;  %v69_v12 = vsub.s32 3, %v468_v3  ;;  %v77_v14 = vsub.s32 5, %v468_v3  ;;  %v81_v15 = vsub.s32 6, %v468_v3 }
  0x3b   :  { %v58_v13 = vrot.slane %v53_v11, %v57_v5  ;;  %v62_v16 = vrot.slane %v53_v11, %v61_v6  ;;  %v66_v17 = vrot.slane %v53_v11, %v65_v7  ;;  %v74_v21 = vrot.slane %v53_v11, %v73_v9  ;;  %p386_p13 = por %p385_p12, %p384_p11 }
  0x3c   :  { %v104_v19 = vrot.slane %v50_v10, %v474_v8  ;;  %v85_v22 = vsub.s32 7, %v468_v3  ;;  %v70_v23 = vrot.slane %v53_v11, %v69_v12  ;;  %v111_v24 = vrot.slane %v97_v18, %v474_v8 }
  0x3d   :  { %v78_v27 = vrot.slane %v53_v11, %v77_v14  ;;  %v82_v28 = vrot.slane %v53_v11, %v81_v15  ;;  %v121_v30 = vrot.slane %v51_v20, %v474_v8  ;;  %v128_v36 = vrot.slane %v114_v29, %v474_v8  ;;  %p387_p0 = pnand %p386_p13, %p380_p10 }
  0x3e   :  { %v112_v25 = vcombine.high %v104_v19, %v104_v19  ;;  %v139_v26 = vmul.f32 %v104_v19, %v58_v13  ;;  %v113_v31 = vcombine.high %v111_v24, %v111_v24  ;;  %v141_v33 = vmul.f32 %v111_v24, %v66_v17 }
  0x3f   :  { %v86_v35 = vrot.slane %v53_v11, %v85_v22  ;;  %v129_v37 = vcombine.high %v121_v30, %v121_v30  ;;  %v143_v38 = vmul.f32 %v121_v30, %v74_v21  ;;  %v130_v42 = vcombine.high %v128_v36, %v128_v36 }
  0x40   :  { %v140_v32 = vmul.f32 %v112_v25, %v62_v16  ;;  %v147_v34 = vmul.f32 0.5, %v139_v26  ;;  %v142_v39 = vmul.f32 %v113_v31, %v70_v23  ;;  %v149_v41 = vmul.f32 0.5, %v141_v33 }
  0x41   :  { %v144_v43 = vmul.f32 %v129_v37, %v78_v27  ;;  %v145_v44 = vmul.f32 %v128_v36, %v82_v28  ;;  %v151_v45 = vmul.f32 0.5, %v143_v38  ;;  %v146_v47 = vmul.f32 %v130_v42, %v86_v35 }
  0x42   :  { %v148_v40 = vmul.f32 0.5, %v140_v32  ;;  %297 = vtanh.f32 %v147_v34  ;;  %v150_v46 = vmul.f32 0.5, %v142_v39  ;;  %v183_v54 = vrot.slane %v52_v51, %v57_v5 }
  0x43   :  { %v152_v48 = vmul.f32 0.5, %v144_v43  ;;  %v153_v49 = vmul.f32 0.5, %v145_v44  ;;  %v154_v50 = vmul.f32 0.5, %v146_v47  ;;  %v187_v59 = vrot.slane %v52_v51, %v61_v6 }
  0x44   :  { %299 = vtanh.f32 %v148_v40  ;;  %v191_v62 = vrot.slane %v52_v51, %v65_v7  ;;  %v195_v2 = vrot.slane %v52_v51, %v69_v12  ;;  %v199_v5 = vrot.slane %v52_v51, %v73_v9 }
  0x45   :  { %301 = vtanh.f32 %v149_v41  ;;  %v203_v16 = vrot.slane %v52_v51, %v77_v14  ;;  %v207_v7 = vrot.slane %v52_v51, %v81_v15  ;;  %v211_v24 = vrot.slane %v52_v51, %v85_v22 }
  0x46   :  { %303 = vtanh.f32 %v150_v46 }
  0x47   :  { %305 = vtanh.f32 %v151_v45 }
  0x48   :  { %307 = vtanh.f32 %v152_v48 }
  0x49   :  { %309 = vtanh.f32 %v153_v49 }
  0x4a   :  { %311 = vtanh.f32 %v154_v50 }
  0x4c   :  { %v298_v52 = vpop.eup %297 }
  0x4d   :  { %v163_v53 = vmul.f32 0.5, %v298_v52 }
  0x4e   :  { %v300_v55 = vpop.eup %299 }
  0x4f   :  { %v302_v56 = vpop.eup %301  ;;  %v164_v57 = vmul.f32 0.5, %v300_v55  ;;  %v171_v58 = vadd.f32 0.5, %v163_v53 }
  0x50   :  { %v304_v60 = vpop.eup %303  ;;  %v165_v61 = vmul.f32 0.5, %v302_v56 }
  0x51   :  { %v306_v63 = vpop.eup %305  ;;  %v166_v0 = vmul.f32 0.5, %v304_v60  ;;  %v172_v1 = vadd.f32 0.5, %v164_v57  ;;  %v220_v4 = vmul.f32 %v183_v54, %v171_v58 }
  0x52   :  { %v308_v10 = vpop.eup %307  ;;  %v173_v11 = vadd.f32 0.5, %v165_v61  ;;  %v167_v13 = vmul.f32 0.5, %v306_v63 }
  0x53   :  { %v310_v6 = vpop.eup %309  ;;  %v174_v17 = vadd.f32 0.5, %v166_v0  ;;  %v221_v18 = vmul.f32 %v187_v59, %v172_v1  ;;  %v168_v19 = vmul.f32 0.5, %v308_v10 }
  0x54   :  { %v312_v20 = vpop.eup %311  ;;  %v222_v21 = vmul.f32 %v191_v62, %v173_v11  ;;  %v169_v12 = vmul.f32 0.5, %v310_v6  ;;  %v175_v23 = vadd.f32 0.5, %v167_v13 }
  0x55   :  { %v223_v25 = vmul.f32 %v195_v2, %v174_v17  ;;  %v236_v26 = vcombine.low %v220_v4, %v221_v18  ;;  %v170_v9 = vmul.f32 0.5, %v312_v20  ;;  %v176_v27 = vadd.f32 0.5, %v168_v19 }
  0x56   :  { %v177_v28 = vadd.f32 0.5, %v169_v12  ;;  %v224_v14 = vmul.f32 %v199_v5, %v175_v23 }
  0x57   :  { %v237_v29 = vcombine.low %v222_v21, %v223_v25  ;;  %v244_v30 = vrot.slane %v236_v26, %v474_v8  ;;  %v178_v31 = vadd.f32 0.5, %v170_v9  ;;  %v225_v32 = vmul.f32 %v203_v16, %v176_v27 }
  0x58   :  { %v226_v33 = vmul.f32 %v207_v7, %v177_v28 }
  0x59   :  { %v251_v15 = vrot.slane %v237_v29, %v474_v8  ;;  %v227_v34 = vmul.f32 %v211_v24, %v178_v31  ;;  %v253_v35 = vcombine.low %v224_v14, %v225_v32 }
  0x5b   :  { %v252_v36 = vcombine.low %v244_v30, %v251_v15  ;;  %v254_v37 = vcombine.low %v226_v33, %v227_v34  ;;  %v261_v3 = vrot.slane %v253_v35, %v474_v8 }
  0x5d   :  { %272 = vst [vmem:[#allocation8] sm:$0xff] %v252_v36  ;;  %v268_v22 = vrot.slane %v254_v37, %v474_v8 }
  0x5f   :  { %v269_v38 = vcombine.low %v261_v3, %v268_v22 }
  0x61   :  { %273 = vst [vmem:[#allocation8 + $0x8] sm:$0xff] %v269_v38 }
  0x62   :  { %390 = shalt.err (!%p387_p0)
}
  0x63   :  { %s391_s23 = scalar_lea.hbm %s524_s3, 256 }
  0x64   :  { %p392_p1 = scmp.ne.s32.totalorder %s524_s3, %s391_s23  ;;  %p395_p2 = scmp.lt.u32.totalorder %s391_s23, %s524_s3 }
  0x66   :  { %p397_p3 = pnand %p395_p2, %p392_p1 }
  0x68   :  { %400 = shalt.err (!%p397_p3)
}
  0x69   :  { %283 = dma.vmem_to_hbm [thread:$0]  %s281_s19, 256, %s524_s3, [#allocation4]  }
  0x6a   :  { %405 = dma.done.wait [#allocation4], 256  }
  0x6b   :  { %406 = vsyncadd [#allocation4], 4294967040 }
  0x6c   :  { %287 = vsyncpa [#allocation3], 1 }
  0x6d   :  { %288 = vsyncpa [#allocation6], 1 }
  0x6e   :  { %289 = vsyncpa [#allocation4], 1 }

</bundles_post_ra>
